<compile_context>
chip_gen: v7x
topology: tpu7x:2x2x1
jax: 0.10.0
libtpu: 0.0.40
codegen_flags: <defaults>
</compile_context>

<pallas_src>
import jax
import jax.numpy as jnp
from jax.experimental import pallas as pl
from jax.experimental.pallas import tpu as pltpu

INPUT_SIZE = 10
HIDDEN_SIZE = 32
OUTPUT_SIZE = 2

TILE_B_MAX = 8192   # batch rows per grid step (multiple of 128)
MIN_TILES = 2       # try to give v7x's two TensorCores at least one tile each


def _cdiv(a, b):
    return (a + b - 1) // b


def _round_up(n, m):
    return ((n + m - 1) // m) * m


def mlp_kernel(x_ref, w1_ref, b1_ref, w2_ref, b2_ref, out_ref):
    # x_ref: (tile_b, INPUT_SIZE) -- natural batch-major tile straight from HBM.
    # Transpose in-kernel (XLU; hidden under the x DMA) so batch lives in the
    # lane dimension for both matmuls, the ReLU, and the lane-dense store.
    x_t = x_ref[...].T                                            # (INPUT, tile_b)
    h = jnp.dot(w1_ref[...], x_t, preferred_element_type=jnp.float32)
    h = jnp.maximum(h + b1_ref[...], 0.0)                         # (HIDDEN, tile_b)
    y = jnp.dot(w2_ref[...], h, preferred_element_type=jnp.float32)
    out_ref[...] = (y + b2_ref[...]).astype(out_ref.dtype)        # (OUTPUT, tile_b)


def simple_nn_forward(x, w1, b1, w2, b2):
    """x: (B, INPUT_SIZE) f32.
    w1: (HIDDEN, INPUT), b1: (HIDDEN, 1), w2: (OUTPUT, HIDDEN), b2: (OUTPUT, 1)
    (PyTorch nn.Linear layout, biases as columns). Returns (B, OUTPUT) f32."""
    B = x.shape[0]

    # Tile balancing: at least MIN_TILES grid steps when possible (v7x megacore),
    # at most TILE_B_MAX rows per step, rounded to the 128-lane granule so the
    # ragged tail wastes <= 127 rows of DMA/compute.
    n_tiles = max(MIN_TILES, _cdiv(B, TILE_B_MAX))
    tile_b = min(TILE_B_MAX, _round_up(_cdiv(B, n_tiles), 128))
    grid = (_cdiv(B, tile_b),)

    out_t = pl.pallas_call(
        mlp_kernel,
        out_shape=jax.ShapeDtypeStruct((OUTPUT_SIZE, B), jnp.float32),
        grid=grid,
        in_specs=[
            pl.BlockSpec((tile_b, INPUT_SIZE), lambda i: (i, 0)),        # x (streamed)
            pl.BlockSpec((HIDDEN_SIZE, INPUT_SIZE), lambda i: (0, 0)),   # w1 (VMEM-resident)
            pl.BlockSpec((HIDDEN_SIZE, 1), lambda i: (0, 0)),            # b1 (resident)
            pl.BlockSpec((OUTPUT_SIZE, HIDDEN_SIZE), lambda i: (0, 0)),  # w2 (resident)
            pl.BlockSpec((OUTPUT_SIZE, 1), lambda i: (0, 0)),            # b2 (resident)
        ],
        out_specs=pl.BlockSpec((OUTPUT_SIZE, tile_b), lambda i: (0, i)),
        compiler_params=pltpu.CompilerParams(
            dimension_semantics=("parallel",),
            # Lane-padded (tile_b, 10) input double-buffers + the (32, tile_b)
            # intermediate exceed v5e's 16 MiB scoped default at tile_b=8192;
            # 40 MiB stays well under every generation's physical VMEM.
            vmem_limit_bytes=40 * 1024 * 1024,
        ),
    )(x, w1, b1, w2, b2)

    return out_t.T   # tiny (2, B) -> (B, 2) transpose outside the kernel


def init_params(key):
    """Deterministic init mirroring nn.Linear default (uniform +/- 1/sqrt(fan_in)),
    stored in PyTorch (out_features, in_features) layout, biases as columns."""
    k1, k2, k3, k4 = jax.random.split(key, 4)
    bound1 = 1.0 / (INPUT_SIZE ** 0.5)
    bound2 = 1.0 / (HIDDEN_SIZE ** 0.5)
    w1 = jax.random.uniform(k1, (HIDDEN_SIZE, INPUT_SIZE), jnp.float32, -bound1, bound1)
    b1 = jax.random.uniform(k2, (HIDDEN_SIZE, 1), jnp.float32, -bound1, bound1)
    w2 = jax.random.uniform(k3, (OUTPUT_SIZE, HIDDEN_SIZE), jnp.float32, -bound2, bound2)
    b2 = jax.random.uniform(k4, (OUTPUT_SIZE, 1), jnp.float32, -bound2, bound2)
    return w1, b1, w2, b2


def reference(x, w1, b1, w2, b2):
    h = jnp.maximum(x @ w1.T + b1.T, 0.0)
    return h @ w2.T + b2.T


if __name__ == "__main__":
    key = jax.random.PRNGKey(0)
    k_params, k_x1, k_x2 = jax.random.split(key, 3)
    params = init_params(k_params)

    # Small case: single grid step, ragged block (8 valid rows of a 128-row tile).
    batch = 8
    x_small = jax.random.normal(k_x1, (batch, INPUT_SIZE), dtype=jnp.float32)
    out_small = jax.block_until_ready(simple_nn_forward(x_small, *params))
    ref_small = reference(x_small, *params)
    assert out_small.shape == (batch, OUTPUT_SIZE)
    assert jnp.allclose(out_small, ref_small, atol=1e-4, rtol=1e-4)

    # Multi-tile case: tile balancing -> tile_b=384, grid=(2,), ragged tail tile.
    batch_big = 700
    x_big = jax.random.normal(k_x2, (batch_big, INPUT_SIZE), dtype=jnp.float32)
    out_big = jax.block_until_ready(simple_nn_forward(x_big, *params))
    ref_big = reference(x_big, *params)
    assert out_big.shape == (batch_big, OUTPUT_SIZE)
    assert jnp.allclose(out_big, ref_big, atol=1e-4, rtol=1e-4)

    print("KERNEL_OK")
</pallas_src>

<mosaic_0001>
module attributes {stable_mosaic.version = 11 : i64} {
  func.func @mlp_kernel(%arg0: i32, %arg1: memref<128x10xf32, #tpu.memory_space<vmem>>, %arg2: memref<32x10xf32, #tpu.memory_space<vmem>>, %arg3: memref<32x1xf32, #tpu.memory_space<vmem>>, %arg4: memref<2x32xf32, #tpu.memory_space<vmem>>, %arg5: memref<2x1xf32, #tpu.memory_space<vmem>>, %arg6: memref<2x128xf32, #tpu.memory_space<vmem>>) attributes {dimension_semantics = [#tpu.dimension_semantics<parallel>], iteration_bounds = array<i64: 1>, scalar_prefetch = 0 : i64, scratch_operands = 0 : i64, tpu.core_type = #tpu.core_type<tc>, window_params = [{transform_indices = @transform_0, window_bounds = array<i64: 128, 10>}, {pipeline_mode = #tpu.pipeline_mode<synchronous>, transform_indices = @transform_1, window_bounds = array<i64: 32, 10>}, {pipeline_mode = #tpu.pipeline_mode<synchronous>, transform_indices = @transform_2, window_bounds = array<i64: 32, 1>}, {pipeline_mode = #tpu.pipeline_mode<synchronous>, transform_indices = @transform_3, window_bounds = array<i64: 2, 32>}, {pipeline_mode = #tpu.pipeline_mode<synchronous>, transform_indices = @transform_4, window_bounds = array<i64: 2, 1>}, {transform_indices = @transform_5, window_bounds = array<i64: 2, 128>}]} {
    %c0 = arith.constant 0 : index
    %c0_0 = arith.constant 0 : index
    %0 = vector.load %arg1[%c0, %c0_0] : memref<128x10xf32, #tpu.memory_space<vmem>>, vector<128x10xf32>
    %1 = tpu.transpose %0, [1, 0] : vector<128x10xf32> -> vector<10x128xf32>
    %c0_1 = arith.constant 0 : index
    %c0_2 = arith.constant 0 : index
    %2 = vector.load %arg2[%c0_1, %c0_2] : memref<32x10xf32, #tpu.memory_space<vmem>>, vector<32x10xf32>
    %cst = arith.constant dense<0.000000e+00> : vector<32x128xf32>
    %3 = tpu.matmul %2, %1, %cst {dimension_numbers = #tpu.dot_dimension_numbers<[1], [0], [0], [1], [0, 0, 1, 1], [], []>} : vector<32x10xf32>, vector<10x128xf32>, vector<32x128xf32> -> vector<32x128xf32>
    %c0_3 = arith.constant 0 : index
    %c0_4 = arith.constant 0 : index
    %4 = vector.load %arg3[%c0_3, %c0_4] : memref<32x1xf32, #tpu.memory_space<vmem>>, vector<32x1xf32>
    %5 = vector.broadcast %4 : vector<32x1xf32> to vector<32x128xf32>
    %6 = arith.addf %3, %5 : vector<32x128xf32>
    %cst_5 = arith.constant 0.000000e+00 : f32
    %7 = vector.broadcast %cst_5 : f32 to vector<32x128xf32>
    %8 = arith.maximumf %6, %7 : vector<32x128xf32>
    %c0_6 = arith.constant 0 : index
    %c0_7 = arith.constant 0 : index
    %9 = vector.load %arg4[%c0_6, %c0_7] : memref<2x32xf32, #tpu.memory_space<vmem>>, vector<2x32xf32>
    %cst_8 = arith.constant dense<0.000000e+00> : vector<2x128xf32>
    %10 = tpu.matmul %9, %8, %cst_8 {dimension_numbers = #tpu.dot_dimension_numbers<[1], [0], [0], [1], [0, 0, 1, 1], [], []>} : vector<2x32xf32>, vector<32x128xf32>, vector<2x128xf32> -> vector<2x128xf32>
    %c0_9 = arith.constant 0 : index
    %c0_10 = arith.constant 0 : index
    %11 = vector.load %arg5[%c0_9, %c0_10] : memref<2x1xf32, #tpu.memory_space<vmem>>, vector<2x1xf32>
    %12 = vector.broadcast %11 : vector<2x1xf32> to vector<2x128xf32>
    %13 = arith.addf %10, %12 : vector<2x128xf32>
    %c0_11 = arith.constant 0 : index
    %c0_12 = arith.constant 0 : index
    %14 = vector.load %arg6[%c0_11, %c0_12] : memref<2x128xf32, #tpu.memory_space<vmem>>, vector<2x128xf32>
    tpu.vector_store %arg6[%c0_11, %c0_12], %13 {strides = array<i32>} : memref<2x128xf32, #tpu.memory_space<vmem>>, vector<2x128xf32>,
    return
  }
  func.func @transform_0(%arg0: i32) -> (i32, i32) {
    %c0_i32 = arith.constant 0 : i32
    %c0_i32_0 = arith.constant 0 : i32
    return %arg0, %c0_i32 : i32, i32
  }
  func.func @transform_1(%arg0: i32) -> (i32, i32) {
    %c0_i32 = arith.constant 0 : i32
    %c0_i32_0 = arith.constant 0 : i32
    %c0_i32_1 = arith.constant 0 : i32
    return %c0_i32, %c0_i32_0 : i32, i32
  }
  func.func @transform_2(%arg0: i32) -> (i32, i32) {
    %c0_i32 = arith.constant 0 : i32
    %c0_i32_0 = arith.constant 0 : i32
    %c0_i32_1 = arith.constant 0 : i32
    return %c0_i32, %c0_i32_0 : i32, i32
  }
  func.func @transform_3(%arg0: i32) -> (i32, i32) {
    %c0_i32 = arith.constant 0 : i32
    %c0_i32_0 = arith.constant 0 : i32
    %c0_i32_1 = arith.constant 0 : i32
    return %c0_i32, %c0_i32_0 : i32, i32
  }
  func.func @transform_4(%arg0: i32) -> (i32, i32) {
    %c0_i32 = arith.constant 0 : i32
    %c0_i32_0 = arith.constant 0 : i32
    %c0_i32_1 = arith.constant 0 : i32
    return %c0_i32, %c0_i32_0 : i32, i32
  }
  func.func @transform_5(%arg0: i32) -> (i32, i32) {
    %c0_i32 = arith.constant 0 : i32
    %c0_i32_0 = arith.constant 0 : i32
    return %c0_i32, %arg0 : i32, i32
  }
}

</mosaic_0001>

<bundles_post_ra>
// kernel: tpu_custom_call.1
= control target key start
LH: loop header
LB: loop body
LE: loop exit
PB: predicated region body
PF: predicated region fallthrough
CT: control target
= control target key end

     0   :  { %vm65_vm0 = vcmask 80896   ;;  %v491_v6 = vmov 0   ;;  %s658_s0 = inlined_call_operand.vmem [shape: f32[8,10], index: 0, kind: input, shape index: {}]   ;;  %s659_s1 = inlined_call_operand.vmem [shape: f32[32,10], index: 1, kind: input, shape index: {}]   ;;  %s660_s2 = inlined_call_operand.vmem [shape: f32[32,1], index: 2, kind: input, shape index: {}]   ;;  %s661_s3 = inlined_call_operand.vmem [shape: f32[2,32], index: 3, kind: input, shape index: {}]   ;;  %s662_s4 = inlined_call_operand.vmem [shape: f32[2,1], index: 4, kind: input, shape index: {}]   ;;  %s663_s5 = inlined_call_operand.hbm [shape: f32[2,8], index: 5, kind: output, shape index: {}]  }
   0x1   :  { %v21_v0 = vld [vmem:[%s658_s0] sm:$0xff]  ;;  %v22_v1 = vld [vmem:[%s658_s0 + $0x8] sm:$0xff]  ;;  %v23_v2 = vld [vmem:[%s658_s0 + $0x10] sm:$0xff]  ;;  %465 = vset.pattern.permute.xlu0 %v491_v6  ;;  %466 = vset.pattern.permute.xlu1 %v491_v6 }
   0x2   :  { %v406_v3 = vpack.c.bf16 %v22_v1, %v21_v0  ;;  %vm537_vm1 = vmpackc.low %vm65_vm0, %vm65_vm0  ;;  %v24_v5 = vld [vmem:[%s658_s0 + $0x18] sm:$0xff]  ;;  %v37_v8 = vld [vmem:[%s659_s1] sm:$0xff] }
   0x3   :  { %v412_v7 = vpack.c.bf16 %v24_v5, %v23_v2  ;;  %v25_v9 = vld [vmem:[%s658_s0 + $0x20] sm:$0xff]  ;;  %v26_v10 = vld [vmem:[%s658_s0 + $0x28] sm:$0xff]  ;;  %389 = vmatprep.mubr.msk.f32.mxu0 %vm65_vm0, %v37_v8  ;;  %v43_v12 = vld [vmem:[%s660_s2 + $0x10] sm:$0xff] }
   0x4   :  { %408 = vmatprep.subr.msk.bf16.mxu0 %vm537_vm1, %v406_v3  ;;  %v41_v11 = vld [vmem:[%s660_s2] sm:$0xff]  ;;  %57 = vperm.xlu1 %466, %v43_v12  }
   0x5   :  { %411 = vmatpush3.bf16.xpose.msk.msra.mxu0 %vm537_vm1, %v406_v3  ;;  %47 = vperm.xlu0 %465, %v41_v11  }
   0x6   :  { %414 = vmatprep.subr.msk.bf16.mxu0 %vm537_vm1, %v412_v7 }
   0x7   :  { %10 = vsyncpa [#allocation3], 0  ;;  %v418_v13 = vpack.c.bf16 %v26_v10, %v25_v9  ;;  %v42_v14 = vld [vmem:[%s660_s2 + $0x8] sm:$0xff]  ;;  %v44_v15 = vld [vmem:[%s660_s2 + $0x18] sm:$0xff]  ;;  %v492_v35 = vmov 0.0|0.0   ;;  %vm493_vm2 = vmmov 0  }
   0x8   :  { %v216_v16 = vld [vmem:[%s662_s4] sm:$0x3]  ;;  %62 = vperm.xlu1 %466, %v44_v15   ;;  %v27_v17 = vld [vmem:[%s658_s0 + $0x30] sm:$0xff]  ;;  %v28_v18 = vld [vmem:[%s658_s0 + $0x38] sm:$0xff]  ;;  %454 = vmatprep.subr.bf16.mxu1 %v492_v35  ;;  %v494_v36 = vmov 0.0   ;;  %vm222_vm3 = vcmask 261120  }
   0x9   :  { %52 = vperm.xlu0 %465, %v42_v14   ;;  %v424_v19 = vpack.c.bf16 %v28_v18, %v27_v17  ;;  %v29_v20 = vld [vmem:[%s658_s0 + $0x40] sm:$0xff]  ;;  %v30_v21 = vld [vmem:[%s658_s0 + $0x48] sm:$0xff]  ;;  %v31_v23 = vld [vmem:[%s658_s0 + $0x50] sm:$0xff]  ;;  %403 = vmatprep.mubr.msk.f32.mxu1 %vm493_vm2, %v494_v36  ;;  %s495_s16 = smov [#allocation2]  }
   0xa   :  { %v430_v22 = vpack.c.bf16 %v30_v21, %v29_v20  ;;  %v32_v24 = vld [vmem:[%s658_s0 + $0x58] sm:$0xff]  ;;  %v33_v26 = vld [vmem:[%s658_s0 + $0x60] sm:$0xff]  ;;  %v34_v27 = vld [vmem:[%s658_s0 + $0x68] sm:$0xff]  ;;  %s303_s17 = sshll.u32 %s495_s16, 4  ;;  %s304_s17 = int_to_ptr.vmem [resolvable:$true] %s303_s17 }
   0xb   :  { %v436_v25 = vpack.c.bf16 %v32_v24, %v31_v23  ;;  %v442_v28 = vpack.c.bf16 %v34_v27, %v33_v26  ;;  %v35_v29 = vld [vmem:[%s658_s0 + $0x70] sm:$0xff]  ;;  %v36_v30 = vld [vmem:[%s658_s0 + $0x78] sm:$0xff]  ;;  %v38_v32 = vld [vmem:[%s659_s1 + $0x8] sm:$0xff]  ;;  %s467_s18 = scalar_lea.vmem %s304_s17, 32  ;;  %p472_p1 = scmp.lt.s32.totalorder %s304_s17, %s304_s17 }
   0xc   :  { %v448_v31 = vpack.c.bf16 %v36_v30, %v35_v29  ;;  %v39_v33 = vld [vmem:[%s659_s1 + $0x10] sm:$0xff]  ;;  %v40_v34 = vld [vmem:[%s659_s1 + $0x18] sm:$0xff]  ;;  %v215_v55 = vld [vmem:[%s661_s3] sm:$0x3]  ;;  %p468_p0 = scmp.ne.s32.totalorder %s304_s17, %s467_s18  ;;  %p473_p2 = scmp.lt.s32.totalorder %s467_s18, %s467_s18 }
   0xd   :  { %417 = vmatpush3.bf16.xpose.msk.msra.mxu0 %vm537_vm1, %v412_v7  ;;  %219 = vperm.xlu0 %465, %v216_v16  }
   0xe   :  { %420 = vmatprep.subr.msk.bf16.mxu0 %vm537_vm1, %v418_v13  ;;  %p474_p3 = por %p473_p2, %p472_p1 }
  0x10   :  { %p475_p4 = pnand %p474_p3, %p468_p0 }
  0x15   :  { %423 = vmatpush3.bf16.xpose.msk.msra.mxu0 %vm537_vm1, %v418_v13 }
  0x16   :  { %426 = vmatprep.subr.msk.bf16.mxu0 %vm537_vm1, %v424_v19 }
  0x1d   :  { %429 = vmatpush3.bf16.xpose.msk.msra.mxu0 %vm537_vm1, %v424_v19 }
  0x1e   :  { %432 = vmatprep.subr.msk.bf16.mxu0 %vm537_vm1, %v430_v22 }
  0x25   :  { %435 = vmatpush3.bf16.xpose.msk.msra.mxu0 %vm537_vm1, %v430_v22 }
  0x26   :  { %438 = vmatprep.subr.msk.bf16.mxu0 %vm537_vm1, %v436_v25 }
  0x2d   :  { %441 = vmatpush3.bf16.xpose.msk.msra.mxu0 %vm537_vm1, %v436_v25 }
  0x2e   :  { %444 = vmatprep.subr.msk.bf16.mxu0 %vm537_vm1, %v442_v28 }
  0x35   :  { %447 = vmatpush3.bf16.xpose.msk.msra.mxu0 %vm537_vm1, %v442_v28 }
  0x36   :  { %450 = vmatprep.subr.msk.bf16.mxu0 %vm537_vm1, %v448_v31 }
  0x3d   :  { %453 = vmatpush3.bf16.xpose.msk.msra.mxu0 %vm537_vm1, %v448_v31 }
  0x44   :  { %390 = vmatmul.mubr.msk.f32.vlgmr.msra.gmra.mrb[0].mxu0 %vm65_vm0, %v38_v32 }
  0x45   :  { %392 = vmatprep.mubr.msk.f32.mxu0 %vm65_vm0, %v39_v33 }
  0x48   :  { %393 = vmatmul.mubr.msk.f32.gmra.mrb[2].mxu0 %vm65_vm0, %v40_v34 }
  0x83   :  { %v58_v38 = vpop.permute.xlu1 %57 }
  0x84   :  { %v48_v37 = vpop.permute.xlu0 %47 }
  0x87   :  { %v63_v45 = vpop.permute.xlu1 %62 }
  0x88   :  { %v53_v39 = vpop.permute.xlu0 %52 }
  0x8c   :  { %v220_v56 = vpop.permute.xlu0 %219 }
 0x117   :  { %v391_v40 = vpop.f32.mrb[0].mxu0 }
 0x118   :  { %v198_v41 = vadd.f32 %v391_v40, %v53_v39  ;;  %v192_v42 = vpop.f32.mrb[1].mxu0 }
 0x119   :  { %v193_v43 = vadd.f32 %v192_v42, %v48_v37 }
 0x11a   :  { %v212_v44 = vmax.f32 %v198_v41, 0.0 }
 0x11b   :  { %v211_v46 = vmax.f32 %v193_v43, 0.0  ;;  %v394_v47 = vpop.f32.mrb[2].mxu0 }
 0x11c   :  { %v208_v48 = vadd.f32 %v394_v47, %v63_v45  ;;  %v202_v49 = vpop.f32.mrb[3].mxu0 }
 0x11d   :  { %v203_v50 = vadd.f32 %v202_v49, %v58_v38  ;;  %v455_v51 = vpack.c.bf16 %v212_v44, %v211_v46 }
 0x11e   :  { %v214_v52 = vmax.f32 %v208_v48, 0.0 }
 0x11f   :  { %v213_v53 = vmax.f32 %v203_v50, 0.0  ;;  %456 = vmatpush3.bf16.msra.mxu1 %v455_v51 }
 0x120   :  { %457 = vmatprep.subr.bf16.mxu1 %v492_v35 }
 0x121   :  { %v458_v54 = vpack.c.bf16 %v214_v52, %v213_v53 }
 0x123   :  { %459 = vmatpush3.bf16.msra.mxu1 %v458_v54 }
 0x126   :  { %404 = vmatmul.mubr.msk.f32.vlgmr.msra.gmra.mrb[0].mxu1 %vm222_vm3, %v215_v55 }
 0x1f9   :  { %v292_v57 = vpop.f32.mrb[0].mxu1 }
 0x1fa   :  { %v293_v58 = vadd.f32 %v292_v57, %v220_v56  ;;  %v405_v59 = vpop.f32.mrb[1].mxu1 }
 0x1fc   :  { %296 = vst [vmem:[#allocation2] sm:$0x3] %v293_v58 }
 0x1fd   :  { %478 = shalt.err (!%p475_p4)
}
 0x1fe   :  { %s479_s3 = scalar_lea.hbm %s663_s5, 32 }
 0x1ff   :  { %p480_p5 = scmp.ne.s32.totalorder %s663_s5, %s479_s3  ;;  %p483_p6 = scmp.lt.u32.totalorder %s479_s3, %s663_s5 }
 0x201   :  { %p485_p7 = pnand %p483_p6, %p480_p5 }
 0x203   :  { %488 = shalt.err (!%p485_p7)
}
 0x204   :  { %306 = dma.vmem_to_hbm [thread:$0]  %s304_s17, 32, %s663_s5, [#allocation3]  }
 0x205   :  { %489 = dma.done.wait [#allocation3], 32  }
 0x206   :  { %490 = vsyncadd [#allocation3], 4294967264 }
 0x207   :  { %310 = vsyncpa [#allocation3], 1 }

</bundles_post_ra>
